<compile_context>
chip_gen: v7x
topology: tpu7x:2x2x1
jax: 0.10.0
libtpu: 0.0.40
codegen_flags: <defaults>
</compile_context>

<pallas_src>
import functools

import jax
import jax.numpy as jnp
from jax.experimental import pallas as pl
from jax.experimental.pallas import tpu as pltpu


def rnn_kernel(
    x_ref,      # (S, Bb, I)  input sequence slab (one batch block)
    wih_ref,    # (I, H)      RNN input weights (transposed)
    whh_ref,    # (H, H)      RNN hidden weights (transposed)
    b_ref,      # (1, H)      combined RNN bias (b_ih + b_hh)
    wfc_ref,    # (H, O)      final linear weights (transposed)
    bfc_ref,    # (1, O)      final linear bias
    out_ref,    # (Bb, O)     output slab
    *,
    n_chains,   # static: number of independent batch sub-chains to interleave
):
    S, Bb, I = x_ref.shape
    cb = Bb // n_chains

    # Cast MXU operands to bf16 ONCE (native MXU dtype on v5e/v6e/v7x);
    # accumulation stays f32 via preferred_element_type.
    wih = wih_ref[...].astype(jnp.bfloat16)
    whh = whh_ref[...].astype(jnp.bfloat16)
    b = b_ref[...]  # f32

    # ---- input projection, per timestep / per chain (off the serial path) ---
    # Each dot is 2-D on a clean leading-axis / sublane-aligned slice; these
    # have no dependence on the recurrence, so the scheduler overlaps them
    # with the serial chain below.
    x_bf = x_ref[...].astype(jnp.bfloat16)
    xw = [
        [
            jnp.dot(x_bf[t, c * cb:(c + 1) * cb, :], wih,
                    preferred_element_type=jnp.float32) + b
            for c in range(n_chains)
        ]
        for t in range(S)
    ]

    # ---- serial recurrence: hidden state carried in vregs, fully unrolled ---
    # n_chains independent sub-chains advance in lockstep so their MXU pushes
    # and EUP tanh ops hide each other's latency.  h_0 = 0 => first step needs
    # no h @ W_hh matmul.  Adds / tanh kept in f32.
    hs = [jnp.tanh(xw[0][c]) for c in range(n_chains)]
    for t in range(1, S):
        hs = [
            jnp.tanh(
                xw[t][c]
                + jnp.dot(hs[c].astype(jnp.bfloat16), whh,
                          preferred_element_type=jnp.float32)
            )
            for c in range(n_chains)
        ]

    # ---- final fully-connected layer on the last hidden state ---------------
    # O is tiny (masked store); lane-dense output only matters if O scales.
    h = hs[0] if n_chains == 1 else jnp.concatenate(hs, axis=0)
    out_ref[...] = (
        jnp.dot(h.astype(jnp.bfloat16), wfc_ref[...].astype(jnp.bfloat16),
                preferred_element_type=jnp.float32)
        + bfc_ref[...]
    ).astype(out_ref.dtype)


def rnn_forward(x, params, *, batch_block=None, n_chains=None):
    """x: (S, B, I) float32. Returns (B, n_outputs) float32."""
    S, B, I = x.shape
    H = params["whh"].shape[0]
    O = params["wfc"].shape[1]

    # Default: the WHOLE batch in one grid step (grid=(1,)).  Only block the
    # batch (caller-provided batch_block) if a single slab would blow VMEM.
    if batch_block is None:
        batch_block = B
    assert B % batch_block == 0, "batch must be divisible by batch_block"
    nb = B // batch_block
    if nb > 1:
        assert batch_block % 8 == 0, "blocked batch must be a multiple of 8"

    # Interleave up to 4 independent sub-chains when the slab is big enough
    # (each sub-chain a multiple of 8 rows -> sublane-aligned slices).
    if n_chains is None:
        n_chains = 1
        for c in (4, 2):
            if batch_block % (8 * c) == 0:
                n_chains = c
                break

    kernel = functools.partial(rnn_kernel, n_chains=n_chains)

    in_specs = [
        # batch-blocked input slab
        pl.BlockSpec((S, batch_block, I), lambda b: (0, b, 0)),
        # weights / biases: fully resident, same block for every grid point
        pl.BlockSpec((I, H), lambda b: (0, 0)),
        pl.BlockSpec((H, H), lambda b: (0, 0)),
        pl.BlockSpec((1, H), lambda b: (0, 0)),
        pl.BlockSpec((H, O), lambda b: (0, 0)),
        pl.BlockSpec((1, O), lambda b: (0, 0)),
    ]
    out_specs = pl.BlockSpec((batch_block, O), lambda b: (b, 0))

    return pl.pallas_call(
        kernel,
        out_shape=jax.ShapeDtypeStruct((B, O), jnp.float32),
        grid=(nb,),
        in_specs=in_specs,
        out_specs=out_specs,
        compiler_params=pltpu.CompilerParams(
            # With the default grid=(1,) there is nothing to shard; only mark
            # the batch axis parallel when it is actually blocked.
            dimension_semantics=("parallel",) if nb > 1 else ("arbitrary",),
        ),
    )(
        x,
        params["wih"], params["whh"], params["b"],
        params["wfc"], params["bfc"],
    )


def make_params(key, input_size, hidden_size, n_outputs):
    """Deterministic init mimicking PyTorch's uniform(-1/sqrt(H), 1/sqrt(H))."""
    ks = jax.random.split(key, 6)
    bound = 1.0 / (hidden_size ** 0.5)

    def u(k, shape):
        return jax.random.uniform(k, shape, jnp.float32, -bound, bound)

    return {
        # weights stored transposed so the kernel does `x @ W`
        "wih": u(ks[0], (input_size, hidden_size)),
        "whh": u(ks[1], (hidden_size, hidden_size)),
        "b":   u(ks[2], (1, hidden_size)) + u(ks[3], (1, hidden_size)),  # b_ih+b_hh
        "wfc": u(ks[4], (hidden_size, n_outputs)),
        "bfc": u(ks[5], (1, n_outputs)),
    }


def rnn_reference(x, params, *, mxu_bf16=False):
    """Pure-JAX reference.

    mxu_bf16=False : exact f32 semantics of the PyTorch module.
    mxu_bf16=True  : same math but with matmul operands rounded to bf16 and
                     f32 accumulation, i.e. precision-matched to the kernel.
    """
    def cast(a):
        return a.astype(jnp.bfloat16) if mxu_bf16 else a

    S, B, _ = x.shape
    H = params["whh"].shape[0]
    wih, whh = cast(params["wih"]), cast(params["whh"])
    h = jnp.zeros((B, H), jnp.float32)
    for t in range(S):
        h = jnp.tanh(
            jnp.dot(cast(x[t]), wih, preferred_element_type=jnp.float32)
            + jnp.dot(cast(h), whh, preferred_element_type=jnp.float32)
            + params["b"][0]
        )
    return (
        jnp.dot(cast(h), cast(params["wfc"]), preferred_element_type=jnp.float32)
        + params["bfc"][0]
    )


if __name__ == "__main__":
    # Small shapes consistent with the module: X is (seq_len, batch, input_size).
    # Whole batch in one grid step; B=16 -> 2 interleaved sub-chains of 8 rows.
    S, B, I, H, O = 8, 16, 16, 32, 2

    key = jax.random.PRNGKey(0)
    kx, kp = jax.random.split(key)
    x = jax.random.normal(kx, (S, B, I), dtype=jnp.float32)
    params = make_params(kp, I, H, O)

    out = jax.block_until_ready(rnn_forward(x, params))
    assert out.shape == (B, O) and out.dtype == jnp.float32

    # Primary (tight) correctness gate: precision-matched reference that uses
    # the same bf16-operand / f32-accumulate matmuls as the kernel.
    ref_matched = rnn_reference(x, params, mxu_bf16=True)
    err_matched = float(jnp.max(jnp.abs(out - ref_matched)))
    assert err_matched < 2e-3, f"mismatch vs precision-matched reference: {err_matched}"

    # Sanity check vs the exact-f32 PyTorch-semantics reference.  The bound is
    # set by bf16 operand rounding compounded over S recurrence steps, not by
    # the kernel structure.
    ref_f32 = rnn_reference(x, params, mxu_bf16=False)
    err_f32 = float(jnp.max(jnp.abs(out - ref_f32)))
    assert err_f32 < 1e-1, f"mismatch vs f32 reference: {err_f32}"

    print("KERNEL_OK")
</pallas_src>

<mosaic_0001>
module attributes {stable_mosaic.version = 11 : i64} {
  func.func @rnn_kernel(%arg0: i32, %arg1: memref<8x16x16xf32, #tpu.memory_space<vmem>>, %arg2: memref<16x32xf32, #tpu.memory_space<vmem>>, %arg3: memref<32x32xf32, #tpu.memory_space<vmem>>, %arg4: memref<1x32xf32, #tpu.memory_space<vmem>>, %arg5: memref<32x2xf32, #tpu.memory_space<vmem>>, %arg6: memref<1x2xf32, #tpu.memory_space<vmem>>, %arg7: memref<16x2xf32, #tpu.memory_space<vmem>>) attributes {dimension_semantics = [#tpu.dimension_semantics<arbitrary>], iteration_bounds = array<i64: 1>, scalar_prefetch = 0 : i64, scratch_operands = 0 : i64, tpu.core_type = #tpu.core_type<tc>, window_params = [{transform_indices = @transform_0, window_bounds = array<i64: 8, 16, 16>}, {pipeline_mode = #tpu.pipeline_mode<synchronous>, transform_indices = @transform_1, window_bounds = array<i64: 16, 32>}, {pipeline_mode = #tpu.pipeline_mode<synchronous>, transform_indices = @transform_2, window_bounds = array<i64: 32, 32>}, {pipeline_mode = #tpu.pipeline_mode<synchronous>, transform_indices = @transform_3, window_bounds = array<i64: 1, 32>}, {pipeline_mode = #tpu.pipeline_mode<synchronous>, transform_indices = @transform_4, window_bounds = array<i64: 32, 2>}, {pipeline_mode = #tpu.pipeline_mode<synchronous>, transform_indices = @transform_5, window_bounds = array<i64: 1, 2>}, {transform_indices = @transform_6, window_bounds = array<i64: 16, 2>}]} {
    %c0 = arith.constant 0 : index
    %c0_0 = arith.constant 0 : index
    %0 = vector.load %arg2[%c0, %c0_0] : memref<16x32xf32, #tpu.memory_space<vmem>>, vector<16x32xf32>
    %1 = arith.truncf %0 : vector<16x32xf32> to vector<16x32xbf16>
    %c0_1 = arith.constant 0 : index
    %c0_2 = arith.constant 0 : index
    %2 = vector.load %arg3[%c0_1, %c0_2] : memref<32x32xf32, #tpu.memory_space<vmem>>, vector<32x32xf32>
    %3 = arith.truncf %2 : vector<32x32xf32> to vector<32x32xbf16>
    %c0_3 = arith.constant 0 : index
    %c0_4 = arith.constant 0 : index
    %4 = vector.load %arg4[%c0_3, %c0_4] : memref<1x32xf32, #tpu.memory_space<vmem>>, vector<1x32xf32>
    %c0_5 = arith.constant 0 : index
    %c0_6 = arith.constant 0 : index
    %c0_7 = arith.constant 0 : index
    %5 = vector.load %arg1[%c0_5, %c0_6, %c0_7] : memref<8x16x16xf32, #tpu.memory_space<vmem>>, vector<8x16x16xf32>
    %6 = arith.truncf %5 : vector<8x16x16xf32> to vector<8x16x16xbf16>
    %7 = vector.extract_strided_slice %6 {offsets = [0, 0, 0], sizes = [1, 8, 16], strides = [1, 1, 1]} : vector<8x16x16xbf16> to vector<1x8x16xbf16>
    %8 = vector.shape_cast %7 : vector<1x8x16xbf16> to vector<8x16xbf16>
    %cst = arith.constant dense<0.000000e+00> : vector<8x32xf32>
    %9 = tpu.matmul %8, %1, %cst {dimension_numbers = #tpu.dot_dimension_numbers<[1], [0], [0], [1], [0, 0, 1, 1], [], []>} : vector<8x16xbf16>, vector<16x32xbf16>, vector<8x32xf32> -> vector<8x32xf32>
    %10 = vector.broadcast %4 : vector<1x32xf32> to vector<8x32xf32>
    %11 = arith.addf %9, %10 : vector<8x32xf32>
    %12 = vector.extract_strided_slice %6 {offsets = [0, 8, 0], sizes = [1, 8, 16], strides = [1, 1, 1]} : vector<8x16x16xbf16> to vector<1x8x16xbf16>
    %13 = vector.shape_cast %12 : vector<1x8x16xbf16> to vector<8x16xbf16>
    %cst_8 = arith.constant dense<0.000000e+00> : vector<8x32xf32>
    %14 = tpu.matmul %13, %1, %cst_8 {dimension_numbers = #tpu.dot_dimension_numbers<[1], [0], [0], [1], [0, 0, 1, 1], [], []>} : vector<8x16xbf16>, vector<16x32xbf16>, vector<8x32xf32> -> vector<8x32xf32>
    %15 = vector.broadcast %4 : vector<1x32xf32> to vector<8x32xf32>
    %16 = arith.addf %14, %15 : vector<8x32xf32>
    %17 = vector.extract_strided_slice %6 {offsets = [1, 0, 0], sizes = [1, 8, 16], strides = [1, 1, 1]} : vector<8x16x16xbf16> to vector<1x8x16xbf16>
    %18 = vector.shape_cast %17 : vector<1x8x16xbf16> to vector<8x16xbf16>
    %cst_9 = arith.constant dense<0.000000e+00> : vector<8x32xf32>
    %19 = tpu.matmul %18, %1, %cst_9 {dimension_numbers = #tpu.dot_dimension_numbers<[1], [0], [0], [1], [0, 0, 1, 1], [], []>} : vector<8x16xbf16>, vector<16x32xbf16>, vector<8x32xf32> -> vector<8x32xf32>
    %20 = vector.broadcast %4 : vector<1x32xf32> to vector<8x32xf32>
    %21 = arith.addf %19, %20 : vector<8x32xf32>
    %22 = vector.extract_strided_slice %6 {offsets = [1, 8, 0], sizes = [1, 8, 16], strides = [1, 1, 1]} : vector<8x16x16xbf16> to vector<1x8x16xbf16>
    %23 = vector.shape_cast %22 : vector<1x8x16xbf16> to vector<8x16xbf16>
    %cst_10 = arith.constant dense<0.000000e+00> : vector<8x32xf32>
    %24 = tpu.matmul %23, %1, %cst_10 {dimension_numbers = #tpu.dot_dimension_numbers<[1], [0], [0], [1], [0, 0, 1, 1], [], []>} : vector<8x16xbf16>, vector<16x32xbf16>, vector<8x32xf32> -> vector<8x32xf32>
    %25 = vector.broadcast %4 : vector<1x32xf32> to vector<8x32xf32>
    %26 = arith.addf %24, %25 : vector<8x32xf32>
    %27 = vector.extract_strided_slice %6 {offsets = [2, 0, 0], sizes = [1, 8, 16], strides = [1, 1, 1]} : vector<8x16x16xbf16> to vector<1x8x16xbf16>
    %28 = vector.shape_cast %27 : vector<1x8x16xbf16> to vector<8x16xbf16>
    %cst_11 = arith.constant dense<0.000000e+00> : vector<8x32xf32>
    %29 = tpu.matmul %28, %1, %cst_11 {dimension_numbers = #tpu.dot_dimension_numbers<[1], [0], [0], [1], [0, 0, 1, 1], [], []>} : vector<8x16xbf16>, vector<16x32xbf16>, vector<8x32xf32> -> vector<8x32xf32>
    %30 = vector.broadcast %4 : vector<1x32xf32> to vector<8x32xf32>
    %31 = arith.addf %29, %30 : vector<8x32xf32>
    %32 = vector.extract_strided_slice %6 {offsets = [2, 8, 0], sizes = [1, 8, 16], strides = [1, 1, 1]} : vector<8x16x16xbf16> to vector<1x8x16xbf16>
    %33 = vector.shape_cast %32 : vector<1x8x16xbf16> to vector<8x16xbf16>
    %cst_12 = arith.constant dense<0.000000e+00> : vector<8x32xf32>
    %34 = tpu.matmul %33, %1, %cst_12 {dimension_numbers = #tpu.dot_dimension_numbers<[1], [0], [0], [1], [0, 0, 1, 1], [], []>} : vector<8x16xbf16>, vector<16x32xbf16>, vector<8x32xf32> -> vector<8x32xf32>
    %35 = vector.broadcast %4 : vector<1x32xf32> to vector<8x32xf32>
    %36 = arith.addf %34, %35 : vector<8x32xf32>
    %37 = vector.extract_strided_slice %6 {offsets = [3, 0, 0], sizes = [1, 8, 16], strides = [1, 1, 1]} : vector<8x16x16xbf16> to vector<1x8x16xbf16>
    %38 = vector.shape_cast %37 : vector<1x8x16xbf16> to vector<8x16xbf16>
    %cst_13 = arith.constant dense<0.000000e+00> : vector<8x32xf32>
    %39 = tpu.matmul %38, %1, %cst_13 {dimension_numbers = #tpu.dot_dimension_numbers<[1], [0], [0], [1], [0, 0, 1, 1], [], []>} : vector<8x16xbf16>, vector<16x32xbf16>, vector<8x32xf32> -> vector<8x32xf32>
    %40 = vector.broadcast %4 : vector<1x32xf32> to vector<8x32xf32>
    %41 = arith.addf %39, %40 : vector<8x32xf32>
    %42 = vector.extract_strided_slice %6 {offsets = [3, 8, 0], sizes = [1, 8, 16], strides = [1, 1, 1]} : vector<8x16x16xbf16> to vector<1x8x16xbf16>
    %43 = vector.shape_cast %42 : vector<1x8x16xbf16> to vector<8x16xbf16>
    %cst_14 = arith.constant dense<0.000000e+00> : vector<8x32xf32>
    %44 = tpu.matmul %43, %1, %cst_14 {dimension_numbers = #tpu.dot_dimension_numbers<[1], [0], [0], [1], [0, 0, 1, 1], [], []>} : vector<8x16xbf16>, vector<16x32xbf16>, vector<8x32xf32> -> vector<8x32xf32>
    %45 = vector.broadcast %4 : vector<1x32xf32> to vector<8x32xf32>
    %46 = arith.addf %44, %45 : vector<8x32xf32>
    %47 = vector.extract_strided_slice %6 {offsets = [4, 0, 0], sizes = [1, 8, 16], strides = [1, 1, 1]} : vector<8x16x16xbf16> to vector<1x8x16xbf16>
    %48 = vector.shape_cast %47 : vector<1x8x16xbf16> to vector<8x16xbf16>
    %cst_15 = arith.constant dense<0.000000e+00> : vector<8x32xf32>
    %49 = tpu.matmul %48, %1, %cst_15 {dimension_numbers = #tpu.dot_dimension_numbers<[1], [0], [0], [1], [0, 0, 1, 1], [], []>} : vector<8x16xbf16>, vector<16x32xbf16>, vector<8x32xf32> -> vector<8x32xf32>
    %50 = vector.broadcast %4 : vector<1x32xf32> to vector<8x32xf32>
    %51 = arith.addf %49, %50 : vector<8x32xf32>
    %52 = vector.extract_strided_slice %6 {offsets = [4, 8, 0], sizes = [1, 8, 16], strides = [1, 1, 1]} : vector<8x16x16xbf16> to vector<1x8x16xbf16>
    %53 = vector.shape_cast %52 : vector<1x8x16xbf16> to vector<8x16xbf16>
    %cst_16 = arith.constant dense<0.000000e+00> : vector<8x32xf32>
    %54 = tpu.matmul %53, %1, %cst_16 {dimension_numbers = #tpu.dot_dimension_numbers<[1], [0], [0], [1], [0, 0, 1, 1], [], []>} : vector<8x16xbf16>, vector<16x32xbf16>, vector<8x32xf32> -> vector<8x32xf32>
    %55 = vector.broadcast %4 : vector<1x32xf32> to vector<8x32xf32>
    %56 = arith.addf %54, %55 : vector<8x32xf32>
    %57 = vector.extract_strided_slice %6 {offsets = [5, 0, 0], sizes = [1, 8, 16], strides = [1, 1, 1]} : vector<8x16x16xbf16> to vector<1x8x16xbf16>
    %58 = vector.shape_cast %57 : vector<1x8x16xbf16> to vector<8x16xbf16>
    %cst_17 = arith.constant dense<0.000000e+00> : vector<8x32xf32>
    %59 = tpu.matmul %58, %1, %cst_17 {dimension_numbers = #tpu.dot_dimension_numbers<[1], [0], [0], [1], [0, 0, 1, 1], [], []>} : vector<8x16xbf16>, vector<16x32xbf16>, vector<8x32xf32> -> vector<8x32xf32>
    %60 = vector.broadcast %4 : vector<1x32xf32> to vector<8x32xf32>
    %61 = arith.addf %59, %60 : vector<8x32xf32>
    %62 = vector.extract_strided_slice %6 {offsets = [5, 8, 0], sizes = [1, 8, 16], strides = [1, 1, 1]} : vector<8x16x16xbf16> to vector<1x8x16xbf16>
    %63 = vector.shape_cast %62 : vector<1x8x16xbf16> to vector<8x16xbf16>
    %cst_18 = arith.constant dense<0.000000e+00> : vector<8x32xf32>
    %64 = tpu.matmul %63, %1, %cst_18 {dimension_numbers = #tpu.dot_dimension_numbers<[1], [0], [0], [1], [0, 0, 1, 1], [], []>} : vector<8x16xbf16>, vector<16x32xbf16>, vector<8x32xf32> -> vector<8x32xf32>
    %65 = vector.broadcast %4 : vector<1x32xf32> to vector<8x32xf32>
    %66 = arith.addf %64, %65 : vector<8x32xf32>
    %67 = vector.extract_strided_slice %6 {offsets = [6, 0, 0], sizes = [1, 8, 16], strides = [1, 1, 1]} : vector<8x16x16xbf16> to vector<1x8x16xbf16>
    %68 = vector.shape_cast %67 : vector<1x8x16xbf16> to vector<8x16xbf16>
    %cst_19 = arith.constant dense<0.000000e+00> : vector<8x32xf32>
    %69 = tpu.matmul %68, %1, %cst_19 {dimension_numbers = #tpu.dot_dimension_numbers<[1], [0], [0], [1], [0, 0, 1, 1], [], []>} : vector<8x16xbf16>, vector<16x32xbf16>, vector<8x32xf32> -> vector<8x32xf32>
    %70 = vector.broadcast %4 : vector<1x32xf32> to vector<8x32xf32>
    %71 = arith.addf %69, %70 : vector<8x32xf32>
    %72 = vector.extract_strided_slice %6 {offsets = [6, 8, 0], sizes = [1, 8, 16], strides = [1, 1, 1]} : vector<8x16x16xbf16> to vector<1x8x16xbf16>
    %73 = vector.shape_cast %72 : vector<1x8x16xbf16> to vector<8x16xbf16>
    %cst_20 = arith.constant dense<0.000000e+00> : vector<8x32xf32>
    %74 = tpu.matmul %73, %1, %cst_20 {dimension_numbers = #tpu.dot_dimension_numbers<[1], [0], [0], [1], [0, 0, 1, 1], [], []>} : vector<8x16xbf16>, vector<16x32xbf16>, vector<8x32xf32> -> vector<8x32xf32>
    %75 = vector.broadcast %4 : vector<1x32xf32> to vector<8x32xf32>
    %76 = arith.addf %74, %75 : vector<8x32xf32>
    %77 = vector.extract_strided_slice %6 {offsets = [7, 0, 0], sizes = [1, 8, 16], strides = [1, 1, 1]} : vector<8x16x16xbf16> to vector<1x8x16xbf16>
    %78 = vector.shape_cast %77 : vector<1x8x16xbf16> to vector<8x16xbf16>
    %cst_21 = arith.constant dense<0.000000e+00> : vector<8x32xf32>
    %79 = tpu.matmul %78, %1, %cst_21 {dimension_numbers = #tpu.dot_dimension_numbers<[1], [0], [0], [1], [0, 0, 1, 1], [], []>} : vector<8x16xbf16>, vector<16x32xbf16>, vector<8x32xf32> -> vector<8x32xf32>
    %80 = vector.broadcast %4 : vector<1x32xf32> to vector<8x32xf32>
    %81 = arith.addf %79, %80 : vector<8x32xf32>
    %82 = vector.extract_strided_slice %6 {offsets = [7, 8, 0], sizes = [1, 8, 16], strides = [1, 1, 1]} : vector<8x16x16xbf16> to vector<1x8x16xbf16>
    %83 = vector.shape_cast %82 : vector<1x8x16xbf16> to vector<8x16xbf16>
    %cst_22 = arith.constant dense<0.000000e+00> : vector<8x32xf32>
    %84 = tpu.matmul %83, %1, %cst_22 {dimension_numbers = #tpu.dot_dimension_numbers<[1], [0], [0], [1], [0, 0, 1, 1], [], []>} : vector<8x16xbf16>, vector<16x32xbf16>, vector<8x32xf32> -> vector<8x32xf32>
    %85 = vector.broadcast %4 : vector<1x32xf32> to vector<8x32xf32>
    %86 = arith.addf %84, %85 : vector<8x32xf32>
    %87 = math.tanh %11 : vector<8x32xf32>
    %88 = math.tanh %16 : vector<8x32xf32>
    %89 = arith.truncf %87 : vector<8x32xf32> to vector<8x32xbf16>
    %cst_23 = arith.constant dense<0.000000e+00> : vector<8x32xf32>
    %90 = tpu.matmul %89, %3, %cst_23 {dimension_numbers = #tpu.dot_dimension_numbers<[1], [0], [0], [1], [0, 0, 1, 1], [], []>} : vector<8x32xbf16>, vector<32x32xbf16>, vector<8x32xf32> -> vector<8x32xf32>
    %91 = arith.addf %21, %90 : vector<8x32xf32>
    %92 = math.tanh %91 : vector<8x32xf32>
    %93 = arith.truncf %88 : vector<8x32xf32> to vector<8x32xbf16>
    %cst_24 = arith.constant dense<0.000000e+00> : vector<8x32xf32>
    %94 = tpu.matmul %93, %3, %cst_24 {dimension_numbers = #tpu.dot_dimension_numbers<[1], [0], [0], [1], [0, 0, 1, 1], [], []>} : vector<8x32xbf16>, vector<32x32xbf16>, vector<8x32xf32> -> vector<8x32xf32>
    %95 = arith.addf %26, %94 : vector<8x32xf32>
    %96 = math.tanh %95 : vector<8x32xf32>
    %97 = arith.truncf %92 : vector<8x32xf32> to vector<8x32xbf16>
    %cst_25 = arith.constant dense<0.000000e+00> : vector<8x32xf32>
    %98 = tpu.matmul %97, %3, %cst_25 {dimension_numbers = #tpu.dot_dimension_numbers<[1], [0], [0], [1], [0, 0, 1, 1], [], []>} : vector<8x32xbf16>, vector<32x32xbf16>, vector<8x32xf32> -> vector<8x32xf32>
    %99 = arith.addf %31, %98 : vector<8x32xf32>
    %100 = math.tanh %99 : vector<8x32xf32>
    %101 = arith.truncf %96 : vector<8x32xf32> to vector<8x32xbf16>
    %cst_26 = arith.constant dense<0.000000e+00> : vector<8x32xf32>
    %102 = tpu.matmul %101, %3, %cst_26 {dimension_numbers = #tpu.dot_dimension_numbers<[1], [0], [0], [1], [0, 0, 1, 1], [], []>} : vector<8x32xbf16>, vector<32x32xbf16>, vector<8x32xf32> -> vector<8x32xf32>
    %103 = arith.addf %36, %102 : vector<8x32xf32>
    %104 = math.tanh %103 : vector<8x32xf32>
    %105 = arith.truncf %100 : vector<8x32xf32> to vector<8x32xbf16>
    %cst_27 = arith.constant dense<0.000000e+00> : vector<8x32xf32>
    %106 = tpu.matmul %105, %3, %cst_27 {dimension_numbers = #tpu.dot_dimension_numbers<[1], [0], [0], [1], [0, 0, 1, 1], [], []>} : vector<8x32xbf16>, vector<32x32xbf16>, vector<8x32xf32> -> vector<8x32xf32>
    %107 = arith.addf %41, %106 : vector<8x32xf32>
    %108 = math.tanh %107 : vector<8x32xf32>
    %109 = arith.truncf %104 : vector<8x32xf32> to vector<8x32xbf16>
    %cst_28 = arith.constant dense<0.000000e+00> : vector<8x32xf32>
    %110 = tpu.matmul %109, %3, %cst_28 {dimension_numbers = #tpu.dot_dimension_numbers<[1], [0], [0], [1], [0, 0, 1, 1], [], []>} : vector<8x32xbf16>, vector<32x32xbf16>, vector<8x32xf32> -> vector<8x32xf32>
    %111 = arith.addf %46, %110 : vector<8x32xf32>
    %112 = math.tanh %111 : vector<8x32xf32>
    %113 = arith.truncf %108 : vector<8x32xf32> to vector<8x32xbf16>
    %cst_29 = arith.constant dense<0.000000e+00> : vector<8x32xf32>
    %114 = tpu.matmul %113, %3, %cst_29 {dimension_numbers = #tpu.dot_dimension_numbers<[1], [0], [0], [1], [0, 0, 1, 1], [], []>} : vector<8x32xbf16>, vector<32x32xbf16>, vector<8x32xf32> -> vector<8x32xf32>
    %115 = arith.addf %51, %114 : vector<8x32xf32>
    %116 = math.tanh %115 : vector<8x32xf32>
    %117 = arith.truncf %112 : vector<8x32xf32> to vector<8x32xbf16>
    %cst_30 = arith.constant dense<0.000000e+00> : vector<8x32xf32>
    %118 = tpu.matmul %117, %3, %cst_30 {dimension_numbers = #tpu.dot_dimension_numbers<[1], [0], [0], [1], [0, 0, 1, 1], [], []>} : vector<8x32xbf16>, vector<32x32xbf16>, vector<8x32xf32> -> vector<8x32xf32>
    %119 = arith.addf %56, %118 : vector<8x32xf32>
    %120 = math.tanh %119 : vector<8x32xf32>
    %121 = arith.truncf %116 : vector<8x32xf32> to vector<8x32xbf16>
    %cst_31 = arith.constant dense<0.000000e+00> : vector<8x32xf32>
    %122 = tpu.matmul %121, %3, %cst_31 {dimension_numbers = #tpu.dot_dimension_numbers<[1], [0], [0], [1], [0, 0, 1, 1], [], []>} : vector<8x32xbf16>, vector<32x32xbf16>, vector<8x32xf32> -> vector<8x32xf32>
    %123 = arith.addf %61, %122 : vector<8x32xf32>
    %124 = math.tanh %123 : vector<8x32xf32>
    %125 = arith.truncf %120 : vector<8x32xf32> to vector<8x32xbf16>
    %cst_32 = arith.constant dense<0.000000e+00> : vector<8x32xf32>
    %126 = tpu.matmul %125, %3, %cst_32 {dimension_numbers = #tpu.dot_dimension_numbers<[1], [0], [0], [1], [0, 0, 1, 1], [], []>} : vector<8x32xbf16>, vector<32x32xbf16>, vector<8x32xf32> -> vector<8x32xf32>
    %127 = arith.addf %66, %126 : vector<8x32xf32>
    %128 = math.tanh %127 : vector<8x32xf32>
    %129 = arith.truncf %124 : vector<8x32xf32> to vector<8x32xbf16>
    %cst_33 = arith.constant dense<0.000000e+00> : vector<8x32xf32>
    %130 = tpu.matmul %129, %3, %cst_33 {dimension_numbers = #tpu.dot_dimension_numbers<[1], [0], [0], [1], [0, 0, 1, 1], [], []>} : vector<8x32xbf16>, vector<32x32xbf16>, vector<8x32xf32> -> vector<8x32xf32>
    %131 = arith.addf %71, %130 : vector<8x32xf32>
    %132 = math.tanh %131 : vector<8x32xf32>
    %133 = arith.truncf %128 : vector<8x32xf32> to vector<8x32xbf16>
    %cst_34 = arith.constant dense<0.000000e+00> : vector<8x32xf32>
    %134 = tpu.matmul %133, %3, %cst_34 {dimension_numbers = #tpu.dot_dimension_numbers<[1], [0], [0], [1], [0, 0, 1, 1], [], []>} : vector<8x32xbf16>, vector<32x32xbf16>, vector<8x32xf32> -> vector<8x32xf32>
    %135 = arith.addf %76, %134 : vector<8x32xf32>
    %136 = math.tanh %135 : vector<8x32xf32>
    %137 = arith.truncf %132 : vector<8x32xf32> to vector<8x32xbf16>
    %cst_35 = arith.constant dense<0.000000e+00> : vector<8x32xf32>
    %138 = tpu.matmul %137, %3, %cst_35 {dimension_numbers = #tpu.dot_dimension_numbers<[1], [0], [0], [1], [0, 0, 1, 1], [], []>} : vector<8x32xbf16>, vector<32x32xbf16>, vector<8x32xf32> -> vector<8x32xf32>
    %139 = arith.addf %81, %138 : vector<8x32xf32>
    %140 = math.tanh %139 : vector<8x32xf32>
    %141 = arith.truncf %136 : vector<8x32xf32> to vector<8x32xbf16>
    %cst_36 = arith.constant dense<0.000000e+00> : vector<8x32xf32>
    %142 = tpu.matmul %141, %3, %cst_36 {dimension_numbers = #tpu.dot_dimension_numbers<[1], [0], [0], [1], [0, 0, 1, 1], [], []>} : vector<8x32xbf16>, vector<32x32xbf16>, vector<8x32xf32> -> vector<8x32xf32>
    %143 = arith.addf %86, %142 : vector<8x32xf32>
    %144 = math.tanh %143 : vector<8x32xf32>
    %145 = tpu.concatenate %140, %144 in 0 : vector<8x32xf32>, vector<8x32xf32> -> vector<16x32xf32>
    %146 = arith.truncf %145 : vector<16x32xf32> to vector<16x32xbf16>
    %c0_37 = arith.constant 0 : index
    %c0_38 = arith.constant 0 : index
    %147 = vector.load %arg5[%c0_37, %c0_38] : memref<32x2xf32, #tpu.memory_space<vmem>>, vector<32x2xf32>
    %148 = arith.truncf %147 : vector<32x2xf32> to vector<32x2xbf16>
    %cst_39 = arith.constant dense<0.000000e+00> : vector<16x2xf32>
    %149 = tpu.matmul %146, %148, %cst_39 {dimension_numbers = #tpu.dot_dimension_numbers<[1], [0], [0], [1], [0, 0, 1, 1], [], []>} : vector<16x32xbf16>, vector<32x2xbf16>, vector<16x2xf32> -> vector<16x2xf32>
    %c0_40 = arith.constant 0 : index
    %c0_41 = arith.constant 0 : index
    %150 = vector.load %arg6[%c0_40, %c0_41] : memref<1x2xf32, #tpu.memory_space<vmem>>, vector<1x2xf32>
    %151 = vector.broadcast %150 : vector<1x2xf32> to vector<16x2xf32>
    %152 = arith.addf %149, %151 : vector<16x2xf32>
    %c0_42 = arith.constant 0 : index
    %c0_43 = arith.constant 0 : index
    %153 = vector.load %arg7[%c0_42, %c0_43] : memref<16x2xf32, #tpu.memory_space<vmem>>, vector<16x2xf32>
    tpu.vector_store %arg7[%c0_42, %c0_43], %152 {strides = array<i32>} : memref<16x2xf32, #tpu.memory_space<vmem>>, vector<16x2xf32>,
    return
  }
  func.func @transform_0(%arg0: i32) -> (i32, i32, i32) {
    %c0_i32 = arith.constant 0 : i32
    %c0_i32_0 = arith.constant 0 : i32
    %c0_i32_1 = arith.constant 0 : i32
    return %c0_i32, %arg0, %c0_i32_0 : i32, i32, i32
  }
  func.func @transform_1(%arg0: i32) -> (i32, i32) {
    %c0_i32 = arith.constant 0 : i32
    %c0_i32_0 = arith.constant 0 : i32
    %c0_i32_1 = arith.constant 0 : i32
    return %c0_i32, %c0_i32_0 : i32, i32
  }
  func.func @transform_2(%arg0: i32) -> (i32, i32) {
    %c0_i32 = arith.constant 0 : i32
    %c0_i32_0 = arith.constant 0 : i32
    %c0_i32_1 = arith.constant 0 : i32
    return %c0_i32, %c0_i32_0 : i32, i32
  }
  func.func @transform_3(%arg0: i32) -> (i32, i32) {
    %c0_i32 = arith.constant 0 : i32
    %c0_i32_0 = arith.constant 0 : i32
    %c0_i32_1 = arith.constant 0 : i32
    return %c0_i32, %c0_i32_0 : i32, i32
  }
  func.func @transform_4(%arg0: i32) -> (i32, i32) {
    %c0_i32 = arith.constant 0 : i32
    %c0_i32_0 = arith.constant 0 : i32
    %c0_i32_1 = arith.constant 0 : i32
    return %c0_i32, %c0_i32_0 : i32, i32
  }
  func.func @transform_5(%arg0: i32) -> (i32, i32) {
    %c0_i32 = arith.constant 0 : i32
    %c0_i32_0 = arith.constant 0 : i32
    %c0_i32_1 = arith.constant 0 : i32
    return %c0_i32, %c0_i32_0 : i32, i32
  }
  func.func @transform_6(%arg0: i32) -> (i32, i32) {
    %c0_i32 = arith.constant 0 : i32
    %c0_i32_0 = arith.constant 0 : i32
    return %arg0, %c0_i32 : i32, i32
  }
}

</mosaic_0001>

<bundles_post_ra>
// kernel: tpu_custom_call.1
= control target key start
LH: loop header
LB: loop body
LE: loop exit
PB: predicated region body
PF: predicated region fallthrough
CT: control target
= control target key end

     0   :  { %11 = vsyncpa [#allocation3], 0  ;;  %s2301_s0 = inlined_call_operand.hbm [shape: f32[8,16,16], index: 0, kind: input, shape index: {}]   ;;  %s2302_s1 = inlined_call_operand.hbm [shape: f32[16,32], index: 1, kind: input, shape index: {}]   ;;  %s2303_s2 = inlined_call_operand.vmem [shape: f32[32,32], index: 2, kind: input, shape index: {}]   ;;  %s2304_s3 = inlined_call_operand.vmem [shape: f32[1,32], index: 3, kind: input, shape index: {}]   ;;  %s2305_s4 = inlined_call_operand.vmem [shape: f32[32,2], index: 4, kind: input, shape index: {}]   ;;  %s2306_s5 = inlined_call_operand.vmem [shape: f32[1,2], index: 5, kind: input, shape index: {}]   ;;  %s2307_s6 = inlined_call_operand.vmem [shape: f32[16,2], index: 6, kind: output, shape index: {}]  }
   0x1   :  { %12 = vsyncpa [#allocation5], 0  ;;  %s1993_s21 = smov [#allocation2]   ;;  %s1945_s25 = scalar_lea.hbm %s2301_s0, 2048 }
   0x2   :  { %s18_s22 = sshll.u32 %s1993_s21, 4  ;;  %p1946_p0 = scmp.ne.s32.totalorder %s2301_s0, %s1945_s25  ;;  %s19_s22 = int_to_ptr.vmem [resolvable:$true] %s18_s22 }
   0x3   :  { %p1949_p1 = scmp.lt.u32.totalorder %s1945_s25, %s2301_s0 }
   0x5   :  { %p1951_p2 = pnand %p1949_p1, %p1946_p0 }
   0x7   :  { %1954 = shalt.err (!%p1951_p2)
}
   0x8   :  { %s1955_s30 = scalar_lea.vmem %s19_s22, 2048  ;;  %p1960_p4 = scmp.lt.s32.totalorder %s19_s22, %s19_s22 }
   0x9   :  { %p1956_p3 = scmp.ne.s32.totalorder %s19_s22, %s1955_s30  ;;  %p1961_p5 = scmp.lt.s32.totalorder %s1955_s30, %s1955_s30 }
   0xb   :  { %p1962_p6 = por %p1961_p5, %p1960_p4 }
   0xd   :  { %p1963_p7 = pnand %p1962_p6, %p1956_p3 }
   0xf   :  { %1966 = shalt.err (!%p1963_p7)
}
  0x10   :  { %s1994_s7 = smov 128   ;;  %s1995_s8 = smov 8  }
  0x11   :  { %24 = dma.hbm_to_vmem [thread:$0]  %s2301_s0, 2048, %s19_s22, [#allocation3], %s1994_s7, %s1994_s7, %s1995_s8  }
  0x12   :  { %s1996_s11 = smov [#allocation4]   ;;  %s1967_s15 = scalar_lea.hbm %s2302_s1, 256 }
  0x13   :  { %s30_s12 = sshll.u32 %s1996_s11, 4  ;;  %p1968_p8 = scmp.ne.s32.totalorder %s2302_s1, %s1967_s15  ;;  %s31_s12 = int_to_ptr.vmem [resolvable:$true] %s30_s12 }
  0x14   :  { %p1971_p9 = scmp.lt.u32.totalorder %s1967_s15, %s2302_s1 }
  0x16   :  { %p1973_p10 = pnand %p1971_p9, %p1968_p8 }
  0x18   :  { %1976 = shalt.err (!%p1973_p10)
}
  0x19   :  { %s1977_s20 = scalar_lea.vmem %s31_s12, 256  ;;  %p1982_p12 = scmp.lt.s32.totalorder %s31_s12, %s31_s12 }
  0x1a   :  { %p1978_p11 = scmp.ne.s32.totalorder %s31_s12, %s1977_s20  ;;  %p1983_p13 = scmp.lt.s32.totalorder %s1977_s20, %s1977_s20 }
  0x1c   :  { %p1984_p0 = por %p1983_p13, %p1982_p12 }
  0x1e   :  { %p1985_p1 = pnand %p1984_p0, %p1978_p11 }
  0x20   :  { %1988 = shalt.err (!%p1985_p1)
}
  0x21   :  { %36 = dma.hbm_to_vmem [thread:$0]  %s2302_s1, 256, %s31_s12, [#allocation5], %s1994_s7, %s1994_s7, %s1995_s8  }
  0x22   :  { %1989 = dma.done.wait [#allocation3], 2048  }
  0x23   :  { %1990 = vsyncadd [#allocation3], 4294965248 }
  0x24   :  { %1991 = dma.done.wait [#allocation5], 256  }
  0x25   :  { %1992 = vsyncadd [#allocation5], 4294967040  ;;  %v1997_v0 = vmov 0.0   ;;  %vm1998_vm0 = vmmov 0   ;;  %v52_v1 = vld [vmem:[#allocation4] sm:$0xff]  ;;  %v53_v2 = vld [vmem:[#allocation4 + $0x8] sm:$0xff] }
  0x26   :  { %1621 = vmatprep.subr.bf16.mxu0 %v1997_v0  ;;  %1627 = vmatprep.subr.bf16.mxu1 %v1997_v0  ;;  %v62_v3 = vld [vmem:[#allocation2] sm:$0xff]  ;;  %v2064_v4 = vpack.c.bf16 %v53_v2, %v52_v1  ;;  %v63_v5 = vld [vmem:[#allocation2 + $0x8] sm:$0xff]  ;;  %vm92_vm1 = vcmask 130048   ;;  %v64_v7 = vld [vmem:[#allocation2 + $0x10] sm:$0xff]  ;;  %vm800_vm2 = vcmask 261120   ;;  %vm1502_vm3 = vcmask 15360  }
  0x27   :  { %1623 = vmatprep.mubr.msk.bf16.mxu0 %vm1998_vm0, %v1997_v0  ;;  %1629 = vmatprep.mubr.msk.bf16.mxu1 %vm1998_vm0, %v1997_v0  ;;  %v78_v6 = vpack.c.bf16 %v63_v5, %v62_v3  ;;  %v65_v8 = vld [vmem:[#allocation2 + $0x18] sm:$0xff]  ;;  %v66_v12 = vld [vmem:[#allocation2 + $0x20] sm:$0xff]  ;;  %v67_v13 = vld [vmem:[#allocation2 + $0x28] sm:$0xff] }
  0x28   :  { %1622 = vmatpush3.bf16.msra.mxu0 %v2064_v4  ;;  %1628 = vmatpush3.bf16.msra.mxu1 %v2064_v4  ;;  %v79_v10 = vpack.c.bf16 %v65_v8, %v64_v7  ;;  %v80_v14 = vpack.c.bf16 %v67_v13, %v66_v12  ;;  %v68_v16 = vld [vmem:[#allocation2 + $0x30] sm:$0xff]  ;;  %v69_v17 = vld [vmem:[#allocation2 + $0x38] sm:$0xff]  ;;  %v70_v20 = vld [vmem:[#allocation2 + $0x40] sm:$0xff] }
  0x29   :  { %v137_v9 = vrot.slane %v78_v6, 4  ;;  %1633 = vmatprep.subr.bf16.mxu0 %v1997_v0  ;;  %1639 = vmatprep.subr.bf16.mxu1 %v1997_v0  ;;  %v81_v18 = vpack.c.bf16 %v69_v17, %v68_v16  ;;  %v71_v21 = vld [vmem:[#allocation2 + $0x48] sm:$0xff]  ;;  %v72_v24 = vld [vmem:[#allocation2 + $0x50] sm:$0xff]  ;;  %v73_v25 = vld [vmem:[#allocation2 + $0x58] sm:$0xff] }
  0x2a   :  { %v225_v11 = vrot.slane %v79_v10, 4  ;;  %v313_v15 = vrot.slane %v80_v14, 4  ;;  %v82_v22 = vpack.c.bf16 %v71_v21, %v70_v20  ;;  %v83_v26 = vpack.c.bf16 %v73_v25, %v72_v24  ;;  %v74_v28 = vld [vmem:[#allocation2 + $0x60] sm:$0xff]  ;;  %v75_v29 = vld [vmem:[#allocation2 + $0x68] sm:$0xff]  ;;  %v76_v32 = vld [vmem:[#allocation2 + $0x70] sm:$0xff] }
  0x2b   :  { %1624 = vmatmul.mubr.msk.bf16.vlgmr.msra.gmra.mrb[0].mxu0 %vm92_vm1, %v78_v6  ;;  %1630 = vmatmul.mubr.msk.bf16.vlgmr.msra.gmra.mrb[0].mxu1 %vm92_vm1, %v137_v9  ;;  %v401_v19 = vrot.slane %v81_v18, 4  ;;  %v84_v30 = vpack.c.bf16 %v75_v29, %v74_v28  ;;  %v77_v33 = vld [vmem:[#allocation2 + $0x78] sm:$0xff]  ;;  %v55_v36 = vld [vmem:[%s2303_s2] sm:$0xff]  ;;  %v56_v37 = vld [vmem:[%s2303_s2 + $0x8] sm:$0xff] }
  0x2c   :  { %1634 = vmatpush3.bf16.msra.mxu0 %v2064_v4  ;;  %1640 = vmatpush3.bf16.msra.mxu1 %v2064_v4  ;;  %v489_v23 = vrot.slane %v82_v22, 4  ;;  %v577_v27 = vrot.slane %v83_v26, 4  ;;  %v85_v34 = vpack.c.bf16 %v77_v33, %v76_v32  ;;  %v2147_v38 = vpack.c.bf16 %v56_v37, %v55_v36  ;;  %v57_v39 = vld [vmem:[%s2303_s2 + $0x10] sm:$0xff]  ;;  %v58_v40 = vld [vmem:[%s2303_s2 + $0x18] sm:$0xff]  ;;  %v2173_v42 = vld [vmem:[%s2304_s3] ss:$0 sm:$0xff] }
  0x2d   :  { %1635 = vmatprep.mubr.msk.bf16.mxu0 %vm1998_vm0, %v1997_v0  ;;  %1641 = vmatprep.mubr.msk.bf16.mxu1 %vm1998_vm0, %v1997_v0  ;;  %v665_v31 = vrot.slane %v84_v30, 4  ;;  %v2162_v41 = vpack.c.bf16 %v58_v40, %v57_v39 }
  0x2e   :  { %1645 = vmatprep.subr.bf16.mxu0 %v1997_v0  ;;  %1651 = vmatprep.subr.bf16.mxu1 %v1997_v0  ;;  %v753_v35 = vrot.slane %v85_v34, 4 }
  0x33   :  { %1636 = vmatmul.mubr.msk.bf16.vlgmr.msra.gmra.mrb[4].mxu0 %vm92_vm1, %v79_v10  ;;  %1642 = vmatmul.mubr.msk.bf16.vlgmr.msra.gmra.mrb[4].mxu1 %vm92_vm1, %v225_v11 }
  0x34   :  { %1646 = vmatpush3.bf16.msra.mxu0 %v2064_v4  ;;  %1652 = vmatpush3.bf16.msra.mxu1 %v2064_v4 }
  0x35   :  { %1647 = vmatprep.mubr.msk.bf16.mxu0 %vm1998_vm0, %v1997_v0  ;;  %1653 = vmatprep.mubr.msk.bf16.mxu1 %vm1998_vm0, %v1997_v0 }
  0x36   :  { %1657 = vmatprep.subr.bf16.mxu0 %v1997_v0  ;;  %1663 = vmatprep.subr.bf16.mxu1 %v1997_v0 }
  0x3b   :  { %1648 = vmatmul.mubr.msk.bf16.vlgmr.msra.gmra.mrb[8].mxu0 %vm92_vm1, %v80_v14  ;;  %1654 = vmatmul.mubr.msk.bf16.vlgmr.msra.gmra.mrb[8].mxu1 %vm92_vm1, %v313_v15 }
  0x3c   :  { %1658 = vmatpush3.bf16.msra.mxu0 %v2064_v4  ;;  %1664 = vmatpush3.bf16.msra.mxu1 %v2064_v4 }
  0x3d   :  { %1659 = vmatprep.mubr.msk.bf16.mxu0 %vm1998_vm0, %v1997_v0  ;;  %1665 = vmatprep.mubr.msk.bf16.mxu1 %vm1998_vm0, %v1997_v0 }
  0x3e   :  { %1669 = vmatprep.subr.bf16.mxu0 %v1997_v0  ;;  %1675 = vmatprep.subr.bf16.mxu1 %v1997_v0 }
  0x43   :  { %1660 = vmatmul.mubr.msk.bf16.vlgmr.msra.gmra.mrb[12].mxu0 %vm92_vm1, %v81_v18  ;;  %1666 = vmatmul.mubr.msk.bf16.vlgmr.msra.gmra.mrb[12].mxu1 %vm92_vm1, %v401_v19 }
  0x44   :  { %1670 = vmatpush3.bf16.msra.mxu0 %v2064_v4  ;;  %1676 = vmatpush3.bf16.msra.mxu1 %v2064_v4 }
  0x45   :  { %1671 = vmatprep.mubr.msk.bf16.mxu0 %vm1998_vm0, %v1997_v0  ;;  %1677 = vmatprep.mubr.msk.bf16.mxu1 %vm1998_vm0, %v1997_v0 }
  0x46   :  { %1681 = vmatprep.subr.bf16.mxu0 %v1997_v0  ;;  %1687 = vmatprep.subr.bf16.mxu1 %v1997_v0 }
  0x4b   :  { %1672 = vmatmul.mubr.msk.bf16.vlgmr.msra.gmra.mrb[16].mxu0 %vm92_vm1, %v82_v22  ;;  %1678 = vmatmul.mubr.msk.bf16.vlgmr.msra.gmra.mrb[16].mxu1 %vm92_vm1, %v489_v23 }
  0x4c   :  { %1682 = vmatpush3.bf16.msra.mxu0 %v2064_v4  ;;  %1688 = vmatpush3.bf16.msra.mxu1 %v2064_v4 }
  0x4d   :  { %1683 = vmatprep.mubr.msk.bf16.mxu0 %vm1998_vm0, %v1997_v0  ;;  %1689 = vmatprep.mubr.msk.bf16.mxu1 %vm1998_vm0, %v1997_v0 }
  0x4e   :  { %1693 = vmatprep.subr.bf16.mxu0 %v1997_v0  ;;  %1699 = vmatprep.subr.bf16.mxu1 %v1997_v0 }
  0x53   :  { %1684 = vmatmul.mubr.msk.bf16.vlgmr.msra.gmra.mrb[20].mxu0 %vm92_vm1, %v83_v26  ;;  %1690 = vmatmul.mubr.msk.bf16.vlgmr.msra.gmra.mrb[20].mxu1 %vm92_vm1, %v577_v27 }
  0x54   :  { %1694 = vmatpush3.bf16.msra.mxu0 %v2064_v4  ;;  %1700 = vmatpush3.bf16.msra.mxu1 %v2064_v4 }
  0x55   :  { %1695 = vmatprep.mubr.msk.bf16.mxu0 %vm1998_vm0, %v1997_v0  ;;  %1701 = vmatprep.mubr.msk.bf16.mxu1 %vm1998_vm0, %v1997_v0 }
  0x56   :  { %1705 = vmatprep.subr.bf16.mxu0 %v1997_v0  ;;  %1711 = vmatprep.subr.bf16.mxu1 %v1997_v0 }
  0x5b   :  { %1696 = vmatmul.mubr.msk.bf16.vlgmr.msra.gmra.mrb[24].mxu0 %vm92_vm1, %v84_v30  ;;  %1702 = vmatmul.mubr.msk.bf16.vlgmr.msra.gmra.mrb[24].mxu1 %vm92_vm1, %v665_v31 }
  0x5c   :  { %1706 = vmatpush3.bf16.msra.mxu0 %v2064_v4  ;;  %1707 = vmatprep.mubr.msk.bf16.mxu0 %vm1998_vm0, %v1997_v0 }
  0x5d   :  { %1717 = vmatprep.subr.bf16.mxu0 %v1997_v0  ;;  %1712 = vmatpush3.bf16.msra.mxu1 %v2064_v4 }
  0x5e   :  { %1713 = vmatprep.mubr.msk.bf16.mxu1 %vm1998_vm0, %v1997_v0  ;;  %1725 = vmatprep.subr.bf16.mxu1 %v1997_v0 }
  0x63   :  { %1708 = vmatmul.mubr.msk.bf16.vlgmr.msra.gmra.mrb[28].mxu0 %vm92_vm1, %v85_v34  ;;  %1714 = vmatmul.mubr.msk.bf16.vlgmr.msra.gmra.mrb[28].mxu1 %vm92_vm1, %v753_v35 }
  0x64   :  { %1721 = vmatprep.mubr.msk.bf16.mxu0 %vm1998_vm0, %v1997_v0  ;;  %1718 = vmatpush3.bf16.msra.mxu0 %v2147_v38 }
  0x65   :  { %1726 = vmatpush3.bf16.msra.mxu1 %v2147_v38  ;;  %1719 = vmatprep.subr.bf16.mxu0 %v1997_v0 }
  0x66   :  { %1727 = vmatprep.subr.bf16.mxu1 %v1997_v0  ;;  %1729 = vmatprep.mubr.msk.bf16.mxu1 %vm1998_vm0, %v1997_v0 }
  0x68   :  { %1720 = vmatpush3.bf16.msra.mxu0 %v2162_v41 }
  0x69   :  { %1728 = vmatpush3.bf16.msra.mxu1 %v2162_v41  ;;  %1733 = vmatprep.subr.bf16.mxu0 %v1997_v0 }
  0x6a   :  { %1741 = vmatprep.subr.bf16.mxu1 %v1997_v0 }
  0xfe   :  { %v130_v43 = vpop.f32.mrb[0].mxu0  ;;  %v175_v44 = vpop.f32.mrb[0].mxu1 }
  0xff   :  { %v131_v45 = vadd.f32 %v2173_v42, %v130_v43  ;;  %v176_v46 = vadd.f32 %v2173_v42, %v175_v44  ;;  %v1625_v47 = vpop.f32.mrb[1].mxu0  ;;  %v1631_v48 = vpop.f32.mrb[1].mxu1 }
 0x100   :  { %v133_v49 = vpop.f32.mrb[2].mxu0  ;;  %v178_v50 = vpop.f32.mrb[2].mxu1 }
 0x101   :  { %1913 = vtanh.f32 %v131_v45  ;;  %v1626_v51 = vpop.f32.mrb[3].mxu0  ;;  %v1632_v52 = vpop.f32.mrb[3].mxu1 }
 0x102   :  { %1915 = vtanh.f32 %v176_v46 }
 0x10b   :  { %v1914_v53 = vpop.eup %1913 }
 0x10c   :  { %v1916_v54 = vpop.eup %1915  ;;  %v799_v55 = vpack.c.bf16 %v1914_v53, %v1914_v53 }
 0x10d   :  { %v846_v56 = vpack.c.bf16 %v1916_v54, %v1916_v54 }
 0x10e   :  { %1722 = vmatmul.mubr.msk.bf16.vlgmr.msra.gmra.mrb[4].mxu0 %vm800_vm2, %v799_v55 }
 0x10f   :  { %1730 = vmatmul.mubr.msk.bf16.vlgmr.msra.gmra.mrb[4].mxu1 %vm800_vm2, %v846_v56  ;;  %1734 = vmatpush3.bf16.msra.mxu0 %v2147_v38 }
 0x110   :  { %1742 = vmatpush3.bf16.msra.mxu1 %v2147_v38  ;;  %1735 = vmatprep.subr.bf16.mxu0 %v1997_v0 }
 0x111   :  { %1743 = vmatprep.subr.bf16.mxu1 %v1997_v0  ;;  %1737 = vmatprep.mubr.msk.bf16.mxu0 %vm1998_vm0, %v1997_v0 }
 0x112   :  { %1745 = vmatprep.mubr.msk.bf16.mxu1 %vm1998_vm0, %v1997_v0 }
 0x113   :  { %1736 = vmatpush3.bf16.msra.mxu0 %v2162_v41 }
 0x114   :  { %1744 = vmatpush3.bf16.msra.mxu1 %v2162_v41  ;;  %1749 = vmatprep.subr.bf16.mxu0 %v1997_v0 }
 0x115   :  { %1757 = vmatprep.subr.bf16.mxu1 %v1997_v0 }
 0x1e1   :  { %v838_v57 = vpop.f32.mrb[4].mxu0 }
 0x1e2   :  { %v1837_v58 = vadd.f32 %v2173_v42, %v838_v57  ;;  %v884_v59 = vpop.f32.mrb[4].mxu1  ;;  %v1723_v60 = vpop.f32.mrb[5].mxu0 }
 0x1e3   :  { %v1838_v61 = vadd.f32 %v2173_v42, %v884_v59  ;;  %v1731_v62 = vpop.f32.mrb[5].mxu1  ;;  %v841_v63 = vpop.f32.mrb[6].mxu0 }
 0x1e4   :  { %1917 = vtanh.f32 %v1837_v58  ;;  %v887_v1 = vpop.f32.mrb[6].mxu1  ;;  %v1724_v2 = vpop.f32.mrb[7].mxu0 }
 0x1e5   :  { %1919 = vtanh.f32 %v1838_v61  ;;  %v1732_v3 = vpop.f32.mrb[7].mxu1 }
 0x1ee   :  { %v1918_v4 = vpop.eup %1917 }
 0x1ef   :  { %v1920_v5 = vpop.eup %1919  ;;  %v892_v6 = vpack.c.bf16 %v1918_v4, %v1918_v4 }
 0x1f0   :  { %v938_v7 = vpack.c.bf16 %v1920_v5, %v1920_v5 }
 0x1f1   :  { %1738 = vmatmul.mubr.msk.bf16.vlgmr.msra.gmra.mrb[8].mxu0 %vm800_vm2, %v892_v6 }
 0x1f2   :  { %1746 = vmatmul.mubr.msk.bf16.vlgmr.msra.gmra.mrb[8].mxu1 %vm800_vm2, %v938_v7  ;;  %1750 = vmatpush3.bf16.msra.mxu0 %v2147_v38 }
 0x1f3   :  { %1758 = vmatpush3.bf16.msra.mxu1 %v2147_v38  ;;  %1751 = vmatprep.subr.bf16.mxu0 %v1997_v0 }
 0x1f4   :  { %1759 = vmatprep.subr.bf16.mxu1 %v1997_v0  ;;  %1753 = vmatprep.mubr.msk.bf16.mxu0 %vm1998_vm0, %v1997_v0 }
 0x1f5   :  { %1761 = vmatprep.mubr.msk.bf16.mxu1 %vm1998_vm0, %v1997_v0 }
 0x1f6   :  { %1752 = vmatpush3.bf16.msra.mxu0 %v2162_v41 }
 0x1f7   :  { %1760 = vmatpush3.bf16.msra.mxu1 %v2162_v41  ;;  %1765 = vmatprep.subr.bf16.mxu0 %v1997_v0 }
 0x1f8   :  { %1773 = vmatprep.subr.bf16.mxu1 %v1997_v0 }
 0x2c4   :  { %v930_v8 = vpop.f32.mrb[8].mxu0 }
 0x2c5   :  { %v1839_v9 = vadd.f32 %v2173_v42, %v930_v8  ;;  %v976_v10 = vpop.f32.mrb[8].mxu1  ;;  %v1739_v11 = vpop.f32.mrb[9].mxu0 }
 0x2c6   :  { %v1840_v12 = vadd.f32 %v2173_v42, %v976_v10  ;;  %v1747_v13 = vpop.f32.mrb[9].mxu1  ;;  %v933_v14 = vpop.f32.mrb[10].mxu0 }
 0x2c7   :  { %1921 = vtanh.f32 %v1839_v9  ;;  %v979_v15 = vpop.f32.mrb[10].mxu1  ;;  %v1740_v16 = vpop.f32.mrb[11].mxu0 }
 0x2c8   :  { %1923 = vtanh.f32 %v1840_v12  ;;  %v1748_v17 = vpop.f32.mrb[11].mxu1  ;;  %v1445_v16 = vld [vmem:[%s2305_s4] sm:$0xff] }
 0x2c9   :  { %v1446_v17 = vld [vmem:[%s2305_s4 + $0x8] sm:$0xff] }
 0x2d1   :  { %v1922_v18 = vpop.eup %1921 }
 0x2d2   :  { %v1924_v19 = vpop.eup %1923  ;;  %v984_v20 = vpack.c.bf16 %v1922_v18, %v1922_v18  ;;  %v1447_v18 = vld [vmem:[%s2305_s4 + $0x10] sm:$0xff] }
 0x2d3   :  { %v1030_v21 = vpack.c.bf16 %v1924_v19, %v1924_v19  ;;  %v1449_v19 = vpack.c.bf16 %v1446_v17, %v1445_v16 }
 0x2d4   :  { %1754 = vmatmul.mubr.msk.bf16.vlgmr.msra.gmra.mrb[12].mxu0 %vm800_vm2, %v984_v20  ;;  %v1448_v20 = vld [vmem:[%s2305_s4 + $0x18] sm:$0xff] }
 0x2d5   :  { %1762 = vmatmul.mubr.msk.bf16.vlgmr.msra.gmra.mrb[12].mxu1 %vm800_vm2, %v1030_v21  ;;  %1766 = vmatpush3.bf16.msra.mxu0 %v2147_v38  ;;  %v1450_v21 = vpack.c.bf16 %v1448_v20, %v1447_v18 }
 0x2d6   :  { %1774 = vmatpush3.bf16.msra.mxu1 %v2147_v38  ;;  %1767 = vmatprep.subr.bf16.mxu0 %v1997_v0 }
 0x2d7   :  { %1775 = vmatprep.subr.bf16.mxu1 %v1997_v0  ;;  %1769 = vmatprep.mubr.msk.bf16.mxu0 %vm1998_vm0, %v1997_v0 }
 0x2d8   :  { %1777 = vmatprep.mubr.msk.bf16.mxu1 %vm1998_vm0, %v1997_v0 }
 0x2d9   :  { %1768 = vmatpush3.bf16.msra.mxu0 %v2162_v41 }
 0x2da   :  { %1776 = vmatpush3.bf16.msra.mxu1 %v2162_v41  ;;  %1781 = vmatprep.subr.bf16.mxu0 %v1997_v0 }
 0x2db   :  { %1789 = vmatprep.subr.bf16.mxu1 %v1997_v0 }
 0x3a7   :  { %v1022_v22 = vpop.f32.mrb[12].mxu0 }
 0x3a8   :  { %v1841_v23 = vadd.f32 %v2173_v42, %v1022_v22  ;;  %v1068_v24 = vpop.f32.mrb[12].mxu1  ;;  %v1755_v25 = vpop.f32.mrb[13].mxu0 }
 0x3a9   :  { %v1842_v26 = vadd.f32 %v2173_v42, %v1068_v24  ;;  %v1763_v27 = vpop.f32.mrb[13].mxu1  ;;  %v1025_v28 = vpop.f32.mrb[14].mxu0 }
 0x3aa   :  { %1925 = vtanh.f32 %v1841_v23  ;;  %v1071_v29 = vpop.f32.mrb[14].mxu1  ;;  %v1756_v30 = vpop.f32.mrb[15].mxu0 }
 0x3ab   :  { %1927 = vtanh.f32 %v1842_v26  ;;  %v1764_v31 = vpop.f32.mrb[15].mxu1 }
 0x3b4   :  { %v1926_v32 = vpop.eup %1925 }
 0x3b5   :  { %v1928_v33 = vpop.eup %1927  ;;  %v1076_v34 = vpack.c.bf16 %v1926_v32, %v1926_v32 }
 0x3b6   :  { %v1122_v35 = vpack.c.bf16 %v1928_v33, %v1928_v33 }
 0x3b7   :  { %1770 = vmatmul.mubr.msk.bf16.vlgmr.msra.gmra.mrb[16].mxu0 %vm800_vm2, %v1076_v34 }
 0x3b8   :  { %1778 = vmatmul.mubr.msk.bf16.vlgmr.msra.gmra.mrb[16].mxu1 %vm800_vm2, %v1122_v35  ;;  %1782 = vmatpush3.bf16.msra.mxu0 %v2147_v38 }
 0x3b9   :  { %1790 = vmatpush3.bf16.msra.mxu1 %v2147_v38  ;;  %1783 = vmatprep.subr.bf16.mxu0 %v1997_v0 }
 0x3ba   :  { %1791 = vmatprep.subr.bf16.mxu1 %v1997_v0  ;;  %1785 = vmatprep.mubr.msk.bf16.mxu0 %vm1998_vm0, %v1997_v0 }
 0x3bb   :  { %1793 = vmatprep.mubr.msk.bf16.mxu1 %vm1998_vm0, %v1997_v0 }
 0x3bc   :  { %1784 = vmatpush3.bf16.msra.mxu0 %v2162_v41 }
 0x3bd   :  { %1792 = vmatpush3.bf16.msra.mxu1 %v2162_v41  ;;  %1797 = vmatprep.subr.bf16.mxu0 %v1997_v0 }
 0x3be   :  { %1805 = vmatprep.subr.bf16.mxu1 %v1997_v0 }
 0x48a   :  { %v1114_v36 = vpop.f32.mrb[16].mxu0 }
 0x48b   :  { %v1843_v37 = vadd.f32 %v2173_v42, %v1114_v36  ;;  %v1160_v39 = vpop.f32.mrb[16].mxu1  ;;  %v1771_v40 = vpop.f32.mrb[17].mxu0 }
 0x48c   :  { %v1844_v43 = vadd.f32 %v2173_v42, %v1160_v39  ;;  %v1779_v44 = vpop.f32.mrb[17].mxu1  ;;  %v1117_v45 = vpop.f32.mrb[18].mxu0 }
 0x48d   :  { %1929 = vtanh.f32 %v1843_v37  ;;  %v1163_v46 = vpop.f32.mrb[18].mxu1  ;;  %v1772_v47 = vpop.f32.mrb[19].mxu0 }
 0x48e   :  { %1931 = vtanh.f32 %v1844_v43  ;;  %v1780_v48 = vpop.f32.mrb[19].mxu1 }
 0x497   :  { %v1930_v49 = vpop.eup %1929 }
 0x498   :  { %v1932_v50 = vpop.eup %1931  ;;  %v1168_v51 = vpack.c.bf16 %v1930_v49, %v1930_v49 }
 0x499   :  { %v1214_v52 = vpack.c.bf16 %v1932_v50, %v1932_v50 }
 0x49a   :  { %1786 = vmatmul.mubr.msk.bf16.vlgmr.msra.gmra.mrb[20].mxu0 %vm800_vm2, %v1168_v51 }
 0x49b   :  { %1794 = vmatmul.mubr.msk.bf16.vlgmr.msra.gmra.mrb[20].mxu1 %vm800_vm2, %v1214_v52  ;;  %1798 = vmatpush3.bf16.msra.mxu0 %v2147_v38 }
 0x49c   :  { %1806 = vmatpush3.bf16.msra.mxu1 %v2147_v38  ;;  %1799 = vmatprep.subr.bf16.mxu0 %v1997_v0 }
 0x49d   :  { %1807 = vmatprep.subr.bf16.mxu1 %v1997_v0  ;;  %1801 = vmatprep.mubr.msk.bf16.mxu0 %vm1998_vm0, %v1997_v0 }
 0x49e   :  { %1809 = vmatprep.mubr.msk.bf16.mxu1 %vm1998_vm0, %v1997_v0 }
 0x49f   :  { %1800 = vmatpush3.bf16.msra.mxu0 %v2162_v41 }
 0x4a0   :  { %1808 = vmatpush3.bf16.msra.mxu1 %v2162_v41  ;;  %1813 = vmatprep.subr.bf16.mxu0 %v1997_v0 }
 0x4a1   :  { %1821 = vmatprep.subr.bf16.mxu1 %v1997_v0 }
 0x56d   :  { %v1206_v53 = vpop.f32.mrb[20].mxu0 }
 0x56e   :  { %v1845_v54 = vadd.f32 %v2173_v42, %v1206_v53  ;;  %v1252_v55 = vpop.f32.mrb[20].mxu1  ;;  %v1787_v56 = vpop.f32.mrb[21].mxu0 }
 0x56f   :  { %v1846_v57 = vadd.f32 %v2173_v42, %v1252_v55  ;;  %v1795_v58 = vpop.f32.mrb[21].mxu1  ;;  %v1209_v59 = vpop.f32.mrb[22].mxu0 }
 0x570   :  { %1933 = vtanh.f32 %v1845_v54  ;;  %v1255_v60 = vpop.f32.mrb[22].mxu1  ;;  %v1788_v61 = vpop.f32.mrb[23].mxu0 }
 0x571   :  { %1935 = vtanh.f32 %v1846_v57  ;;  %v1796_v62 = vpop.f32.mrb[23].mxu1 }
 0x57a   :  { %v1934_v63 = vpop.eup %1933 }
 0x57b   :  { %v1936_v1 = vpop.eup %1935  ;;  %v1260_v2 = vpack.c.bf16 %v1934_v63, %v1934_v63 }
 0x57c   :  { %v1306_v3 = vpack.c.bf16 %v1936_v1, %v1936_v1 }
 0x57d   :  { %1802 = vmatmul.mubr.msk.bf16.vlgmr.msra.gmra.mrb[24].mxu0 %vm800_vm2, %v1260_v2 }
 0x57e   :  { %1810 = vmatmul.mubr.msk.bf16.vlgmr.msra.gmra.mrb[24].mxu1 %vm800_vm2, %v1306_v3  ;;  %1814 = vmatpush3.bf16.msra.mxu0 %v2147_v38 }
 0x57f   :  { %1822 = vmatpush3.bf16.msra.mxu1 %v2147_v38  ;;  %1815 = vmatprep.subr.bf16.mxu0 %v1997_v0 }
 0x580   :  { %1823 = vmatprep.subr.bf16.mxu1 %v1997_v0  ;;  %1817 = vmatprep.mubr.msk.bf16.mxu0 %vm1998_vm0, %v1997_v0 }
 0x581   :  { %1825 = vmatprep.mubr.msk.bf16.mxu1 %vm1998_vm0, %v1997_v0 }
 0x582   :  { %1816 = vmatpush3.bf16.msra.mxu0 %v2162_v41 }
 0x583   :  { %1824 = vmatpush3.bf16.msra.mxu1 %v2162_v41  ;;  %1829 = vmatprep.subr.bf16.mxu0 %v1997_v0 }
 0x650   :  { %v1298_v4 = vpop.f32.mrb[24].mxu0 }
 0x651   :  { %v1847_v5 = vadd.f32 %v2173_v42, %v1298_v4  ;;  %v1344_v38 = vpop.f32.mrb[24].mxu1  ;;  %v1803_v6 = vpop.f32.mrb[25].mxu0 }
 0x652   :  { %v1848_v7 = vadd.f32 %v2173_v42, %v1344_v38  ;;  %v1811_v8 = vpop.f32.mrb[25].mxu1  ;;  %v1301_v9 = vpop.f32.mrb[26].mxu0 }
 0x653   :  { %1937 = vtanh.f32 %v1847_v5  ;;  %v1347_v10 = vpop.f32.mrb[26].mxu1  ;;  %v1804_v11 = vpop.f32.mrb[27].mxu0 }
 0x654   :  { %1939 = vtanh.f32 %v1848_v7  ;;  %v1812_v12 = vpop.f32.mrb[27].mxu1 }
 0x65d   :  { %v1938_v13 = vpop.eup %1937 }
 0x65e   :  { %v1940_v14 = vpop.eup %1939  ;;  %v1352_v15 = vpack.c.bf16 %v1938_v13, %v1938_v13 }
 0x65f   :  { %v1398_v41 = vpack.c.bf16 %v1940_v14, %v1940_v14 }
 0x660   :  { %1818 = vmatmul.mubr.msk.bf16.vlgmr.msra.gmra.mrb[28].mxu0 %vm800_vm2, %v1352_v15 }
 0x661   :  { %1826 = vmatmul.mubr.msk.bf16.vlgmr.msra.gmra.mrb[28].mxu1 %vm800_vm2, %v1398_v41  ;;  %1833 = vmatprep.mubr.msk.bf16.mxu0 %vm1998_vm0, %v1997_v0 }
 0x662   :  { %1830 = vmatpush3.bf16.msra.mxu0 %v1449_v19 }
 0x663   :  { %1831 = vmatprep.subr.bf16.mxu0 %v1997_v0  ;;  %v1542_v0 = vld [vmem:[%s2306_s5] ss:$0 sm:$0xff] }
 0x666   :  { %1832 = vmatpush3.bf16.msra.mxu0 %v1450_v21 }
 0x733   :  { %v1390_v22 = vpop.f32.mrb[28].mxu0 }
 0x734   :  { %v1849_v23 = vadd.f32 %v2173_v42, %v1390_v22  ;;  %v1436_v24 = vpop.f32.mrb[28].mxu1  ;;  %v1819_v25 = vpop.f32.mrb[29].mxu0 }
 0x735   :  { %v1850_v26 = vadd.f32 %v2173_v42, %v1436_v24  ;;  %v1827_v27 = vpop.f32.mrb[29].mxu1  ;;  %v1393_v28 = vpop.f32.mrb[30].mxu0 }
 0x736   :  { %1941 = vtanh.f32 %v1849_v23  ;;  %v1439_v29 = vpop.f32.mrb[30].mxu1  ;;  %v1820_v30 = vpop.f32.mrb[31].mxu0 }
 0x737   :  { %1943 = vtanh.f32 %v1850_v26  ;;  %v1828_v31 = vpop.f32.mrb[31].mxu1 }
 0x740   :  { %v1942_v32 = vpop.eup %1941 }
 0x741   :  { %v1944_v33 = vpop.eup %1943 }
 0x742   :  { %v1444_v34 = vpack.c.bf16 %v1944_v33, %v1942_v32 }
 0x744   :  { %1834 = vmatmul.mubr.msk.bf16.vlgmr.msra.gmra.mrb[32].mxu0 %vm800_vm2, %v1444_v34 }
 0x817   :  { %v1495_v35 = vpop.f32.mrb[32].mxu0 }
 0x818   :  { %v1496_v36 = vadd.f32 %v1542_v0, %v1495_v35  ;;  %v1835_v42 = vpop.f32.mrb[33].mxu0 }
 0x819   :  { %v1498_v37 = vpop.f32.mrb[34].mxu0 }
 0x81a   :  { %1503 = vst.msk [vmem:[%s2307_s6] sm:$0xff] %vm1502_vm3, %v1496_v36  ;;  %v1499_v39 = vadd.f32 %v1542_v0, %v1498_v37  ;;  %v1836_v40 = vpop.f32.mrb[35].mxu0 }
 0x81c   :  { %1504 = vst.msk [vmem:[%s2307_s6 + $0x8] sm:$0xff] %vm1502_vm3, %v1499_v39 }
 0x81d   :  { %1509 = vsyncpa [#allocation3], 1 }
 0x81e   :  { %1510 = vsyncpa [#allocation5], 1 }

</bundles_post_ra>
